<compile_context>
chip_gen: v7x
topology: tpu7x:2x2x1
jax: 0.10.0
libtpu: 0.0.40
codegen_flags: <defaults>
</compile_context>

<pallas_src>
import functools
import math

import jax
import jax.numpy as jnp
from jax import lax
from jax.experimental import pallas as pl
from jax.experimental.pallas import tpu as pltpu


# ----------------------------------------------------------------------------
# Generation-aware sizing
# ----------------------------------------------------------------------------
@functools.lru_cache(maxsize=None)
def _hw_params():
    """(tile_bytes, base_vmem_limit, physical_vmem_bytes)."""
    try:
        phys = int(pltpu.get_tpu_info().vmem_capacity_bytes)
    except Exception:
        phys = 64 * 1024 * 1024                       # conservative (v7x-like)
    if phys >= 96 * 1024 * 1024:                      # v5e / v6e: 128 MiB VMEM
        return 8 * 1024 * 1024, 64 * 1024 * 1024, phys
    # v7x: 64 MiB physical per TensorCore; keep double-buffered in+out well under it.
    return 6 * 1024 * 1024, 40 * 1024 * 1024, phys


def _default_tile_bytes():
    return _hw_params()[0]


def _vmem_limit(per_step_block_bytes):
    """Scoped-VMEM cap: base limit, raised if one pipelined step needs more."""
    _, base, phys = _hw_params()
    need = 2 * per_step_block_bytes + (4 << 20)       # double-buffered + headroom
    return int(min(max(base, need), phys * 9 // 10))


def _sublane(dtype):
    """Row alignment for packed sub-32-bit dtypes: 8 f32, 16 bf16, 32 int8."""
    itemsize = jnp.dtype(dtype).itemsize
    return 8 * max(4 // max(itemsize, 1), 1)


def _plan_row_tile(m, n, dtype, tile_bytes):
    """Rows per block: largest dtype-aligned count whose (tm, n) tile fits the
    tile budget; one block if everything fits.  No padding — ragged last blocks
    are handled by masked OOB stores (and in-kernel masking where needed)."""
    itemsize = jnp.dtype(dtype).itemsize
    row_bytes = max(n * itemsize, 1)
    rows_fit = max(int(tile_bytes // row_bytes), 1)
    if rows_fit >= m:
        return m
    sub = _sublane(dtype)
    tm = max((rows_fit // sub) * sub, sub)
    if tm >= m:
        return m
    # TODO(synk): column-tile very wide rows (second 'arbitrary' grid axis for
    # the stats partials) so one sublane-aligned row block never exceeds VMEM.
    return tm


def _lane_dense_2d(weight):
    """Per-tensor layout: reshape the flat weight to (rows, C) with C a multiple
    of 128 when possible (lane-dense, unmasked stores); else fall back to (O,-1)."""
    t = weight.size
    for c in (2048, 1024, 512, 256, 128):
        if t % c == 0:
            return weight.reshape(t // c, c)
    # TODO(synk): lane-dense (cdiv(t,128), 128) fallback with a masked ragged
    # tail for sizes not divisible by 128 (only matters for tiny weights).
    return weight.reshape(weight.shape[0], -1)


# ----------------------------------------------------------------------------
# Kernels
# ----------------------------------------------------------------------------
def _make_pc_fused_kernel(n_cols, a_new, qn, qp):
    """Fused per-channel scale init/EMA + fake quant.  Each row-tile is fully
    independent, so stats, s and w_q are produced from one resident w tile."""
    inv_n = 1.0 / float(n_cols)
    # torch std(ddof=1) parity: n_cols == 1 yields NaN (0 * inf), same as torch.
    inv_nm1 = 1.0 / float(n_cols - 1) if n_cols > 1 else float("inf")

    def kernel(w_ref, s_ref, o_ref):
        w = w_ref[...].astype(jnp.float32)                   # (tm, n)
        ssum = jnp.sum(w, axis=1, keepdims=True)
        ssq = jnp.sum(w * w, axis=1, keepdims=True)
        mean = ssum * inv_n
        var = (ssq - ssum * mean) * inv_nm1                   # unbiased (ddof=1)
        std = jnp.sqrt(jnp.maximum(var, 0.0))
        cand = jnp.maximum(jnp.abs(mean - 3.0 * std), jnp.abs(mean + 3.0 * std))
        s = a_new * cand                                      # (tm, 1)
        s_ref[...] = s.astype(s_ref.dtype)
        inv_s = pl.reciprocal(s, approx=False)                # tiny (tm,1) vector
        q = jnp.round(jnp.clip(w * inv_s, qn, qp))            # ties-to-even == torch
        o_ref[...] = (q * s).astype(o_ref.dtype)

    return kernel


def _make_pt_partials_kernel(m_rows, tm, ragged):
    """Per-tensor stats: each ('parallel') grid step emits its tile's (sum,
    sumsq) as lane-broadcast (1,128) partials.  Ragged last tile is masked."""

    def kernel(w_ref, psum_ref, psq_ref):
        w = w_ref[...].astype(jnp.float32)                    # (tm, n)
        if ragged:
            rows = lax.broadcasted_iota(jnp.int32, w.shape, 0)
            valid = (pl.program_id(0) * tm + rows) < m_rows
            w = jnp.where(valid, w, 0.0)
        ps = jnp.sum(jnp.sum(w, axis=1, keepdims=True), axis=0, keepdims=True)
        pq = jnp.sum(jnp.sum(w * w, axis=1, keepdims=True), axis=0, keepdims=True)
        psum_ref[...] = jnp.broadcast_to(ps, psum_ref.shape)
        psq_ref[...] = jnp.broadcast_to(pq, psq_ref.shape)

    return kernel


def _make_quant_kernel(qn, qp):
    """Fake quant: round(clamp(w * (1/s), Qn, Qp)) * s, f32 compute, stored in
    the weight dtype.  s broadcasts from a (tm,1) or resident (1,1) block."""

    def kernel(w_ref, s_ref, o_ref):
        w = w_ref[...].astype(jnp.float32)
        s = s_ref[...].astype(jnp.float32)
        inv_s = pl.reciprocal(s, approx=False)
        q = jnp.round(jnp.clip(w * inv_s, qn, qp))
        o_ref[...] = (q * s).astype(o_ref.dtype)

    return kernel


# ----------------------------------------------------------------------------
# Pallas wrappers (row-tiled, auto-pipelined, no wrapper-side pad/slice copies)
# ----------------------------------------------------------------------------
def lsq_pc_scale_and_quant(w2d, a_new, qn, qp, tile_bytes=None):
    """Fused per-channel init step: returns (s=(m,1) f32, w_q=(m,n) w.dtype)."""
    m, n = w2d.shape
    tile_bytes = tile_bytes or _default_tile_bytes()
    tm = _plan_row_tile(m, n, w2d.dtype, tile_bytes)
    grid = (pl.cdiv(m, tm),)
    blk = tm * n * jnp.dtype(w2d.dtype).itemsize
    s, w_q = pl.pallas_call(
        _make_pc_fused_kernel(n, float(a_new), float(qn), float(qp)),
        grid=grid,
        in_specs=[pl.BlockSpec((tm, n), lambda i: (i, 0))],
        out_specs=[pl.BlockSpec((tm, 1), lambda i: (i, 0)),
                   pl.BlockSpec((tm, n), lambda i: (i, 0))],
        out_shape=(jax.ShapeDtypeStruct((m, 1), jnp.float32),
                   jax.ShapeDtypeStruct((m, n), w2d.dtype)),
        compiler_params=pltpu.CompilerParams(
            dimension_semantics=("parallel",),
            vmem_limit_bytes=_vmem_limit(2 * blk + 4 * tm)),
    )(w2d)
    return s, w_q


def lsq_pt_update_scale(w2d, s_old, a_old, a_new, tile_bytes=None):
    """Per-tensor scale: parallel per-tile (sum, sumsq) partials + tiny jnp
    finalize.  Returns a_old*s_old + a_new*max(|mean-3std|, |mean+3std|)."""
    m, n = w2d.shape
    tile_bytes = tile_bytes or _default_tile_bytes()
    tm = _plan_row_tile(m, n, w2d.dtype, tile_bytes)
    nt = pl.cdiv(m, tm)
    blk = tm * n * jnp.dtype(w2d.dtype).itemsize
    psum, psq = pl.pallas_call(
        _make_pt_partials_kernel(m, tm, (m % tm) != 0),
        grid=(nt,),
        in_specs=[pl.BlockSpec((tm, n), lambda i: (i, 0))],
        out_specs=[pl.BlockSpec((1, 128), lambda i: (0, i)),
                   pl.BlockSpec((1, 128), lambda i: (0, i))],
        out_shape=(jax.ShapeDtypeStruct((1, 128 * nt), jnp.float32),
                   jax.ShapeDtypeStruct((1, 128 * nt), jnp.float32)),
        compiler_params=pltpu.CompilerParams(
            dimension_semantics=("parallel",),
            vmem_limit_bytes=_vmem_limit(blk + 2 * 128 * 4)),
    )(w2d)
    # Finalize: a handful of scalar ops over nt partials (lane 0 of each block).
    # TODO(synk): one-pass E[x^2]-E[x]^2 can cancel when |mean| >> std; switch
    # to mean-centered per-tile partials if exact torch.std parity ever drifts.
    ssum = jnp.sum(psum.reshape(nt, 128)[:, 0])
    ssq = jnp.sum(psq.reshape(nt, 128)[:, 0])
    cnt = float(m * n)
    mean = ssum / cnt
    var = (ssq - ssum * mean) / (cnt - 1.0)
    std = jnp.sqrt(jnp.maximum(var, 0.0))
    cand = jnp.maximum(jnp.abs(mean - 3.0 * std), jnp.abs(mean + 3.0 * std))
    s_old = jnp.asarray(s_old, jnp.float32).reshape(())
    return (a_old * s_old + a_new * cand).reshape(1, 1)


def lsq_fake_quant(w2d, s, qn, qp, per_channel, tile_bytes=None):
    m, n = w2d.shape
    tile_bytes = tile_bytes or _default_tile_bytes()
    tm = _plan_row_tile(m, n, w2d.dtype, tile_bytes)
    grid = (pl.cdiv(m, tm),)
    blk = tm * n * jnp.dtype(w2d.dtype).itemsize
    if per_channel:
        s2 = jnp.asarray(s, jnp.float32).reshape(m, 1)
        s_spec = pl.BlockSpec((tm, 1), lambda i: (i, 0))
        s_bytes = 4 * tm
    else:
        s2 = jnp.asarray(s, jnp.float32).reshape(1, 1)
        s_spec = pl.BlockSpec((1, 1), lambda i: (0, 0))        # resident scalar block
        s_bytes = 4
    return pl.pallas_call(
        _make_quant_kernel(float(qn), float(qp)),
        grid=grid,
        in_specs=[pl.BlockSpec((tm, n), lambda i: (i, 0)), s_spec],
        out_specs=pl.BlockSpec((tm, n), lambda i: (i, 0)),
        out_shape=jax.ShapeDtypeStruct((m, n), w2d.dtype),
        compiler_params=pltpu.CompilerParams(
            dimension_semantics=("parallel",),
            vmem_limit_bytes=_vmem_limit(2 * blk + s_bytes)),
    )(w2d, s2)


# ----------------------------------------------------------------------------
# Module-equivalent stateful wrapper
# ----------------------------------------------------------------------------
class LSQPlusWeightQuantizer:
    """JAX/Pallas port of the PyTorch LSQPlusWeightQuantizer forward pass.
    (Backward/STE of WLSQPlus is out of scope — forward only.)"""

    def __init__(self, w_bits, all_positive=False, per_channel=False, batch_init=20):
        self.w_bits = w_bits
        self.all_positive = all_positive
        self.per_channel = per_channel
        self.batch_init = batch_init
        if all_positive:
            self.Qn = 0
            self.Qp = 2 ** w_bits - 1
        else:
            self.Qn = -(2 ** (w_bits - 1))
            self.Qp = 2 ** (w_bits - 1) - 1
        self.init_state = 0
        self.g = None
        self.s = jnp.ones((1, 1), jnp.float32)     # torch.nn.Parameter(torch.ones(1))

    def forward(self, weight):
        orig_shape = weight.shape
        out_ch = orig_shape[0]
        if self.per_channel:
            w2d = weight.reshape(out_ch, -1)       # row = output channel
        else:
            w2d = _lane_dense_2d(weight)           # layout plumbing only

        w_q2d = None
        div = float(2 ** self.w_bits - 1)
        if self.init_state == 0:
            self.g = 1.0 / math.sqrt(weight.size * self.Qp)   # parity (unused in fwd)
            if self.per_channel:
                self.s, w_q2d = lsq_pc_scale_and_quant(w2d, 1.0 / div, self.Qn, self.Qp)
            else:
                self.s = lsq_pt_update_scale(w2d, self.s, a_old=0.0, a_new=1.0 / div)
            self.init_state += 1
        elif self.init_state < self.batch_init:
            if self.per_channel:
                # torch: s = cand; s = 0.9*s + 0.1*s/div  ==  cand*(0.9 + 0.1/div)
                self.s, w_q2d = lsq_pc_scale_and_quant(w2d, 0.9 + 0.1 / div,
                                                       self.Qn, self.Qp)
            else:
                # torch: s = 0.9*s + 0.1*cand/div
                self.s = lsq_pt_update_scale(w2d, self.s, a_old=0.9, a_new=0.1 / div)
            self.init_state += 1
        elif self.init_state == self.batch_init:
            self.init_state += 1

        if self.w_bits == 32:
            return weight
        if self.w_bits == 1:
            raise AssertionError("Binary quantization is not supported")

        if w_q2d is None:                          # steady state / per-tensor path
            w_q2d = lsq_fake_quant(w2d, self.s, self.Qn, self.Qp, self.per_channel)
        return w_q2d.reshape(orig_shape)

    __call__ = forward


# ----------------------------------------------------------------------------
# Pure-JAX references (validation only)
# ----------------------------------------------------------------------------
def _ref_candidate(weight, per_channel):
    w2d = weight.reshape(weight.shape[0], -1).astype(jnp.float32)
    if per_channel:
        mean = jnp.mean(w2d, axis=1, keepdims=True)
        std = jnp.std(w2d, axis=1, ddof=1, keepdims=True)
    else:
        mean = jnp.mean(w2d).reshape(1, 1)
        std = jnp.std(w2d, ddof=1).reshape(1, 1)
    return jnp.maximum(jnp.abs(mean - 3.0 * std), jnp.abs(mean + 3.0 * std))


def _ref_quant(weight, s, qn, qp, per_channel):
    w2d = weight.reshape(weight.shape[0], -1).astype(jnp.float32)
    s2 = jnp.asarray(s, jnp.float32).reshape(-1, 1) if per_channel \
        else jnp.asarray(s, jnp.float32).reshape(1, 1)
    q = jnp.round(jnp.clip(w2d * (1.0 / s2), qn, qp)) * s2
    return q.reshape(weight.shape)


# ----------------------------------------------------------------------------
if __name__ == "__main__":
    key = jax.random.PRNGKey(0)
    k1, k2, k3, k4 = jax.random.split(key, 4)

    # Conv OIHW weight whose flattened width (4*3*3=36) is NOT a multiple of 128
    # -> exercises the (O, I*kH*kW) fallback layout.
    w_conv = 0.1 * jax.random.normal(k1, (4, 4, 3, 3), jnp.float32)
    # Element count 16*8*4*4=2048 -> lane-dense per-tensor slab, per-channel (16,128).
    w_dense = 0.05 * jax.random.normal(k2, (16, 8, 4, 4), jnp.float32)

    div = 2.0 ** 8 - 1.0

    # --- init + EMA steps on the conv weight, both modes -----------------------
    for per_channel in (False, True):
        quant = LSQPlusWeightQuantizer(w_bits=8, per_channel=per_channel, batch_init=20)
        wq0 = jax.block_until_ready(quant(w_conv))
        cand = _ref_candidate(w_conv, per_channel)
        assert jnp.allclose(quant.s.ravel(), (cand / div).ravel(),
                            rtol=1e-4, atol=1e-7), "init scale mismatch"
        wq_ref = _ref_quant(w_conv, quant.s, quant.Qn, quant.Qp, per_channel)
        assert jnp.allclose(wq0, wq_ref, rtol=1e-5, atol=1e-6), "init w_q mismatch"
        assert wq0.shape == w_conv.shape and wq0.dtype == w_conv.dtype

        s_prev = quant.s
        wq1 = jax.block_until_ready(quant(w_conv))
        s_exp = cand * (0.9 + 0.1 / div) if per_channel else 0.9 * s_prev + 0.1 * cand / div
        assert jnp.allclose(quant.s.ravel(), s_exp.ravel(),
                            rtol=1e-4, atol=1e-7), "EMA scale mismatch"
        wq_ref1 = _ref_quant(w_conv, quant.s, quant.Qn, quant.Qp, per_channel)
        assert jnp.allclose(wq1, wq_ref1, rtol=1e-5, atol=1e-6), "EMA w_q mismatch"

    # --- init step on the lane-dense weight, both modes ------------------------
    for per_channel in (False, True):
        quant = LSQPlusWeightQuantizer(w_bits=8, per_channel=per_channel, batch_init=20)
        wq0 = jax.block_until_ready(quant(w_dense))
        cand = _ref_candidate(w_dense, per_channel)
        assert jnp.allclose(quant.s.ravel(), (cand / div).ravel(),
                            rtol=1e-4, atol=1e-7), "dense init scale mismatch"
        wq_ref = _ref_quant(w_dense, quant.s, quant.Qn, quant.Qp, per_channel)
        assert jnp.allclose(wq0, wq_ref, rtol=1e-5, atol=1e-6), "dense w_q mismatch"

    # --- multi-tile + ragged-last-block stress (20 rows, tm=8 -> 3 grid steps) --
    w_big = 0.2 * jax.random.normal(k3, (20, 4, 3, 3), jnp.float32)
    w_big2d = w_big.reshape(20, -1)
    cand_pc = _ref_candidate(w_big, True)
    s_pc, wq_pc = lsq_pc_scale_and_quant(w_big2d, 1.0 / div, -128, 127, tile_bytes=1024)
    jax.block_until_ready(wq_pc)
    assert jnp.allclose(s_pc.ravel(), (cand_pc / div).ravel(),
                        rtol=1e-4, atol=1e-7), "ragged pc scale mismatch"
    assert jnp.allclose(wq_pc, _ref_quant(w_big2d, s_pc, -128, 127, True),
                        rtol=1e-5, atol=1e-6), "ragged pc w_q mismatch"

    cand_pt = _ref_candidate(w_big, False)
    s_pt = lsq_pt_update_scale(w_big2d, jnp.ones((1, 1), jnp.float32),
                               a_old=0.0, a_new=1.0 / div, tile_bytes=1024)
    assert jnp.allclose(s_pt.ravel(), (cand_pt / div).ravel(),
                        rtol=1e-4, atol=1e-7), "ragged pt scale mismatch"
    wq_pt = lsq_fake_quant(w_big2d, s_pt, -128, 127, False, tile_bytes=1024)
    jax.block_until_ready(wq_pt)
    assert jnp.allclose(wq_pt, _ref_quant(w_big2d, s_pt, -128, 127, False),
                        rtol=1e-5, atol=1e-6), "ragged pt w_q mismatch"

    # --- bf16 path: packed-sublane-aligned tm (=16), bf16 in / bf16 out --------
    w_bf = (0.07 * jax.random.normal(k4, (32, 256), jnp.float32)).astype(jnp.bfloat16)
    s_bf, wq_bf = lsq_pc_scale_and_quant(w_bf, 1.0 / div, -128, 127, tile_bytes=4096)
    jax.block_until_ready(wq_bf)
    assert wq_bf.dtype == jnp.bfloat16 and wq_bf.shape == w_bf.shape
    cand_bf = _ref_candidate(w_bf, True)
    assert jnp.allclose(s_bf.ravel(), (cand_bf / div).ravel(),
                        rtol=1e-4, atol=1e-7), "bf16 scale mismatch"
    assert jnp.allclose(wq_bf.astype(jnp.float32),
                        _ref_quant(w_bf, s_bf, -128, 127, True),
                        rtol=1e-2, atol=1e-5), "bf16 w_q mismatch"

    print("KERNEL_OK")
</pallas_src>

<mosaic_0001>
module attributes {stable_mosaic.version = 11 : i64} {
  func.func @kernel(%arg0: i32, %arg1: memref<4x36xf32, #tpu.memory_space<vmem>>, %arg2: memref<1x128xf32, #tpu.memory_space<vmem>>, %arg3: memref<1x128xf32, #tpu.memory_space<vmem>>) attributes {dimension_semantics = [#tpu.dimension_semantics<parallel>], iteration_bounds = array<i64: 1>, scalar_prefetch = 0 : i64, scratch_operands = 0 : i64, tpu.core_type = #tpu.core_type<tc>, window_params = [{transform_indices = @transform_0, window_bounds = array<i64: 4, 36>}, {transform_indices = @transform_1, window_bounds = array<i64: 1, 128>}, {transform_indices = @transform_2, window_bounds = array<i64: 1, 128>}]} {
    %c0 = arith.constant 0 : index
    %c0_0 = arith.constant 0 : index
    %0 = vector.load %arg1[%c0, %c0_0] : memref<4x36xf32, #tpu.memory_space<vmem>>, vector<4x36xf32>
    %cst = arith.constant dense<0.000000e+00> : vector<4xf32>
    %1 = vector.multi_reduction <add>, %0, %cst [1] : vector<4x36xf32> to vector<4xf32>
    %2 = vector.shape_cast %1 : vector<4xf32> to vector<4x1xf32>
    %cst_1 = arith.constant dense<0.000000e+00> : vector<1xf32>
    %3 = vector.multi_reduction <add>, %2, %cst_1 [0] : vector<4x1xf32> to vector<1xf32>
    %4 = vector.shape_cast %3 : vector<1xf32> to vector<1x1xf32>
    %5 = arith.mulf %0, %0 : vector<4x36xf32>
    %cst_2 = arith.constant dense<0.000000e+00> : vector<4xf32>
    %6 = vector.multi_reduction <add>, %5, %cst_2 [1] : vector<4x36xf32> to vector<4xf32>
    %7 = vector.shape_cast %6 : vector<4xf32> to vector<4x1xf32>
    %cst_3 = arith.constant dense<0.000000e+00> : vector<1xf32>
    %8 = vector.multi_reduction <add>, %7, %cst_3 [0] : vector<4x1xf32> to vector<1xf32>
    %9 = vector.shape_cast %8 : vector<1xf32> to vector<1x1xf32>
    %10 = vector.shape_cast %4 : vector<1x1xf32> to vector<1x1xf32>
    %11 = vector.broadcast %10 : vector<1x1xf32> to vector<1x128xf32>
    %c0_4 = arith.constant 0 : index
    %c0_5 = arith.constant 0 : index
    %12 = vector.load %arg2[%c0_4, %c0_5] : memref<1x128xf32, #tpu.memory_space<vmem>>, vector<1x128xf32>
    tpu.vector_store %arg2[%c0_4, %c0_5], %11 {strides = array<i32>} : memref<1x128xf32, #tpu.memory_space<vmem>>, vector<1x128xf32>,
    %13 = vector.shape_cast %9 : vector<1x1xf32> to vector<1x1xf32>
    %14 = vector.broadcast %13 : vector<1x1xf32> to vector<1x128xf32>
    %c0_6 = arith.constant 0 : index
    %c0_7 = arith.constant 0 : index
    %15 = vector.load %arg3[%c0_6, %c0_7] : memref<1x128xf32, #tpu.memory_space<vmem>>, vector<1x128xf32>
    tpu.vector_store %arg3[%c0_6, %c0_7], %14 {strides = array<i32>} : memref<1x128xf32, #tpu.memory_space<vmem>>, vector<1x128xf32>,
    return
  }
  func.func @transform_0(%arg0: i32) -> (i32, i32) {
    %c0_i32 = arith.constant 0 : i32
    %c0_i32_0 = arith.constant 0 : i32
    return %arg0, %c0_i32 : i32, i32
  }
  func.func @transform_1(%arg0: i32) -> (i32, i32) {
    %c0_i32 = arith.constant 0 : i32
    %c0_i32_0 = arith.constant 0 : i32
    return %c0_i32, %arg0 : i32, i32
  }
  func.func @transform_2(%arg0: i32) -> (i32, i32) {
    %c0_i32 = arith.constant 0 : i32
    %c0_i32_0 = arith.constant 0 : i32
    return %c0_i32, %arg0 : i32, i32
  }
}

</mosaic_0001>

<bundles_post_ra>
// kernel: tpu_custom_call.1
= control target key start
LH: loop header
LB: loop body
LE: loop exit
PB: predicated region body
PF: predicated region fallthrough
CT: control target
= control target key end

     0   :  { %8 = vsyncpa [#allocation3], 0  ;;  %s208_s0 = inlined_call_operand.hbm [shape: f32[4,36], index: 0, kind: input, shape index: {}]   ;;  %s209_s1 = inlined_call_operand.hbm [shape: f32[1,128], index: 1, kind: output, shape index: {0}]   ;;  %s210_s2 = inlined_call_operand.hbm [shape: f32[1,128], index: 2, kind: output, shape index: {1}]  }
   0x1   :  { %9 = vsyncpa [#allocation4], 0 }
   0x2   :  { %10 = vsyncpa [#allocation7], 0  ;;  %s154_s9 = smov [#allocation2]   ;;  %s82_s13 = scalar_lea.hbm %s208_s0, 64 }
   0x3   :  { %s17_s10 = sshll.u32 %s154_s9, 4  ;;  %p83_p0 = scmp.ne.s32.totalorder %s208_s0, %s82_s13  ;;  %s18_s10 = int_to_ptr.vmem [resolvable:$true] %s17_s10 }
   0x4   :  { %p86_p1 = scmp.lt.u32.totalorder %s82_s13, %s208_s0 }
   0x6   :  { %p88_p2 = pnand %p86_p1, %p83_p0 }
   0x8   :  { %91 = shalt.err (!%p88_p2)
}
   0x9   :  { %s92_s18 = scalar_lea.vmem %s18_s10, 64  ;;  %p97_p4 = scmp.lt.s32.totalorder %s18_s10, %s18_s10 }
   0xa   :  { %p93_p3 = scmp.ne.s32.totalorder %s18_s10, %s92_s18  ;;  %p98_p5 = scmp.lt.s32.totalorder %s92_s18, %s92_s18 }
   0xc   :  { %p99_p6 = por %p98_p5, %p97_p4 }
   0xe   :  { %p100_p7 = pnand %p99_p6, %p93_p3 }
  0x10   :  { %103 = shalt.err (!%p100_p7)
}
  0x11   :  { %20 = dma.hbm_to_vmem [thread:$0]  %s208_s0, 64, %s18_s10, [#allocation3]  }
  0x12   :  { %148 = dma.done.wait [#allocation3], 64  }
  0x13   :  { %149 = vsyncadd [#allocation3], 4294967232  ;;  %vm25_vm0 = vcmask 289792   ;;  %v24_v0 = vld [vmem:[#allocation2] sm:$0xf]  ;;  %vm29_vm1 = vcmask 1043456  }
  0x14   :  { %v26_v1 = vsel %vm25_vm0, %v24_v0, 0.0  ;;  %v37_v2 = vmul.f32 %v24_v0, %v24_v0  ;;  %s155_s0 = smov [#allocation5]   ;;  %s156_s22 = smov [#allocation6]  }
  0x15   :  { %27 = vadd.xlane.f32.xlu0 %v26_v1  ;;  %s56_s21 = sshll.u32 %s155_s0, 4  ;;  %s66_s23 = sshll.u32 %s156_s22, 4  ;;  %s57_s21 = int_to_ptr.vmem [resolvable:$true] %s56_s21  ;;  %s67_s23 = int_to_ptr.vmem [resolvable:$true] %s66_s23 }
  0x16   :  { %v38_v3 = vsel %vm25_vm0, %v37_v2, 0.0  ;;  %s104_s24 = scalar_lea.vmem %s57_s21, 16  ;;  %s108_s25 = scalar_lea.vmem %s57_s21, 32 }
  0x17   :  { %p105_p8 = scmp.ne.s32.totalorder %s57_s21, %s104_s24  ;;  %p109_p9 = scmp.lt.s32.totalorder %s57_s21, %s57_s21 }
  0x18   :  { %p110_p10 = scmp.lt.s32.totalorder %s108_s25, %s104_s24 }
  0x19   :  { %39 = vadd.xlane.f32.xlu0 %v38_v3 }
  0x1a   :  { %p111_p11 = por %p110_p10, %p109_p9 }
  0x1c   :  { %p112_p12 = pnand %p111_p11, %p105_p8 }
  0xa2   :  { %v28_v4 = vpop.xlane.xlu0 %27 }
  0xa3   :  { %v30_v5 = vsel %vm29_vm1, %v28_v4, 0.0 }
  0xa4   :  { %v31_v6 = vrot.slane %v30_v5, 4 }
  0xa6   :  { %v32_v7 = vadd.f32 %v31_v6, %v30_v5  ;;  %v40_v8 = vpop.xlane.xlu0 %39 }
  0xa7   :  { %v41_v9 = vsel %vm29_vm1, %v40_v8, 0.0 }
  0xa8   :  { %v33_v10 = vrot.slane %v32_v7, 2  ;;  %v42_v11 = vrot.slane %v41_v9, 4 }
  0xaa   :  { %v34_v12 = vadd.f32 %v33_v10, %v32_v7  ;;  %v43_v13 = vadd.f32 %v42_v11, %v41_v9 }
  0xac   :  { %v35_v14 = vrot.slane %v34_v12, 1  ;;  %v44_v15 = vrot.slane %v43_v13, 2 }
  0xae   :  { %v45_v16 = vadd.f32 %v44_v15, %v43_v13  ;;  %v36_v17 = vadd.f32 %v35_v14, %v34_v12 }
  0xb0   :  { %v46_v18 = vrot.slane %v45_v16, 1  ;;  %48 = vst [vmem:[#allocation5] sm:$0x1] %v36_v17 }
  0xb1   :  { %115 = shalt.err (!%p112_p12)
}
  0xb2   :  { %s116_s28 = scalar_lea.hbm %s209_s1, 16 }
  0xb3   :  { %p117_p13 = scmp.ne.s32.totalorder %s209_s1, %s116_s28  ;;  %p120_p0 = scmp.lt.u32.totalorder %s116_s28, %s209_s1 }
  0xb5   :  { %p122_p1 = pnand %p120_p0, %p117_p13 }
  0xb7   :  { %125 = shalt.err (!%p122_p1)
}
  0xb8   :  { %59 = dma.vmem_to_hbm [thread:$0]  %s57_s21, 16, %s209_s1, [#allocation4]   ;;  %v47_v19 = vadd.f32 %v46_v18, %v45_v16 }
  0xb9   :  { %s126_s7 = scalar_lea.vmem %s67_s23, 16  ;;  %s130_s8 = scalar_lea.vmem %s67_s23, 32 }
  0xba   :  { %49 = vst [vmem:[#allocation6] sm:$0x1] %v47_v19  ;;  %p127_p2 = scmp.ne.s32.totalorder %s67_s23, %s126_s7  ;;  %p131_p3 = scmp.lt.s32.totalorder %s67_s23, %s67_s23 }
  0xbb   :  { %p132_p4 = scmp.lt.s32.totalorder %s130_s8, %s126_s7 }
  0xbd   :  { %p133_p5 = por %p132_p4, %p131_p3 }
  0xbf   :  { %p134_p6 = pnand %p133_p5, %p127_p2 }
  0xc1   :  { %137 = shalt.err (!%p134_p6)
}
  0xc2   :  { %s138_s11 = scalar_lea.hbm %s210_s2, 16 }
  0xc3   :  { %p139_p7 = scmp.ne.s32.totalorder %s210_s2, %s138_s11  ;;  %p142_p8 = scmp.lt.u32.totalorder %s138_s11, %s210_s2 }
  0xc5   :  { %p144_p9 = pnand %p142_p8, %p139_p7 }
  0xc7   :  { %147 = shalt.err (!%p144_p9)
}
  0xc8   :  { %69 = dma.vmem_to_hbm [thread:$0]  %s67_s23, 16, %s210_s2, [#allocation7]  }
  0xc9   :  { %150 = dma.done.wait [#allocation4], 16  }
  0xca   :  { %151 = vsyncadd [#allocation4], 4294967280 }
  0xcb   :  { %152 = dma.done.wait [#allocation7], 16  }
  0xcc   :  { %153 = vsyncadd [#allocation7], 4294967280 }
  0xcd   :  { %76 = vsyncpa [#allocation3], 1 }
  0xce   :  { %77 = vsyncpa [#allocation4], 1 }
  0xcf   :  { %78 = vsyncpa [#allocation7], 1 }

</bundles_post_ra>
